<compile_context>
chip_gen: v5e
topology: v5e:2x2
jax: 0.10.0
libtpu: 0.0.40
codegen_flags: <defaults>
</compile_context>

<pallas_src>
import functools

import jax
import jax.numpy as jnp
from jax import lax
from jax.experimental import pallas as pl
from jax.experimental.pallas import tpu as pltpu


def _round_up(a, b):
    return -(-a // b) * b


_CHUNK_ROWS = 1024          # 1024 x 128 f32 = 512 KiB live per intermediate
_DEFAULT_TILE_CAP = 8192    # 8192 x 128 f32 = 4 MiB per input per pipeline buffer


def _choose_tiling(n_rows, tile_cap):
    """tile_rows (multiple of 8, chunk_rows divides it) and chunk_rows."""
    tile_cap = max(8, int(tile_cap))
    if n_rows <= _CHUNK_ROWS or tile_cap <= _CHUNK_ROWS:
        tile_rows = min(_round_up(n_rows, 8), _round_up(tile_cap, 8))
        chunk_rows = tile_rows
    else:
        tile_rows = min(_round_up(n_rows, _CHUNK_ROWS),
                        (tile_cap // _CHUNK_ROWS) * _CHUNK_ROWS)
        chunk_rows = _CHUNK_ROWS
    return tile_rows, chunk_rows


# --------------------------- MSE streaming kernel ---------------------------

def _mse_partial_kernel(recon_ref, x_ref, out_ref, *,
                        tile_rows, chunk_rows, n_rows, ragged):
    """One grid step: fold sum((recon - x)^2) of this (tile_rows, 128) tile into a
    lane-dense (8,128) f32 partial, chunk_rows rows at a time (bounds the live
    elementwise intermediates instead of materializing the whole tile)."""
    i = pl.program_id(0)
    n_chunks = tile_rows // chunk_rows

    def body(c, acc):
        start = pl.multiple_of(c * chunk_rows, chunk_rows)
        r = recon_ref[pl.ds(start, chunk_rows), :].astype(jnp.float32)
        xv = x_ref[pl.ds(start, chunk_rows), :].astype(jnp.float32)
        d = r - xv
        sq = d * d
        if ragged:
            # Last grid block is partial: rows >= n_rows contain garbage (Pallas
            # out-of-bounds reads are undefined) -> mask them to 0.  This branch is
            # statically removed when n_rows is a multiple of tile_rows.
            row = (i * tile_rows + start
                   + lax.broadcasted_iota(jnp.int32, (chunk_rows, 128), 0))
            sq = jnp.where(row < n_rows, sq, 0.0)
        # VPU-only fold to one vreg-sized (8,128) accumulator.
        return acc + jnp.sum(sq.reshape(chunk_rows // 8, 8, 128), axis=0)

    acc = lax.fori_loop(0, n_chunks, body,
                        jnp.zeros((8, 128), jnp.float32), unroll=True)
    out_ref[0] = acc   # single store per grid step


# ------------------------------ BCE micro kernel -----------------------------

def _bce_fold_kernel(pred_ref, target_ref, out_ref):
    """Whole (zero-padded, lane-dense) classification head in one block: fold the
    un-normalized BCE sum into an (8,128) block.  Padded entries have p=0, t=0 ->
    -(0*max(log 0,-100) + 1*log 1) == 0, so padding contributes nothing."""
    p = pred_ref[...].astype(jnp.float32)
    t = target_ref[...].astype(jnp.float32)
    log_p = jnp.maximum(jnp.log(p), -100.0)          # torch BCELoss log clamp
    log_1mp = jnp.maximum(jnp.log(1.0 - p), -100.0)
    bce = -(t * log_p + (1.0 - t) * log_1mp)
    bp, cp = bce.shape
    out_ref[...] = jnp.sum(bce.reshape(bp // 8, 8, cp // 128, 128), axis=(0, 2))


# ---------------------------------- wrapper ----------------------------------

def double_loss(pred, recon, x, target, lambd=0.5, *, tile_cap=_DEFAULT_TILE_CAP):
    """JAX/Pallas equivalent of DoubleLoss.forward((pred, recon), x, target)."""
    B, n_classes = pred.shape
    assert target.shape == (B, n_classes)
    assert recon.shape[0] == B and x.size == recon.size

    # ---- BCE term: tiny one-shot micro kernel, kept out of the streaming loop ----
    bp = _round_up(B, 8)
    cp = _round_up(n_classes, 128)
    if (bp, cp) != (B, n_classes):
        pred_p = jnp.pad(pred, ((0, bp - B), (0, cp - n_classes)))
        target_p = jnp.pad(target, ((0, bp - B), (0, cp - n_classes)))
    else:
        pred_p, target_p = pred, target

    bce_fold = pl.pallas_call(
        _bce_fold_kernel,
        out_shape=jax.ShapeDtypeStruct((8, 128), jnp.float32),
        grid=(1,),
        in_specs=[pl.BlockSpec((bp, cp), lambda i: (0, 0)),
                  pl.BlockSpec((bp, cp), lambda i: (0, 0))],
        out_specs=pl.BlockSpec((8, 128), lambda i: (0, 0)),
        compiler_params=pltpu.CompilerParams(vmem_limit_bytes=48 * 1024 * 1024),
        cost_estimate=pl.CostEstimate(
            flops=8 * bp * cp,
            transcendentals=2 * bp * cp,
            bytes_accessed=int(bp * cp * (pred.dtype.itemsize + target.dtype.itemsize)
                               + 8 * 128 * 4)),
    )(pred_p, target_p)

    # ---- MSE term: stream flattened recon/x through lane-dense (tile_rows,128) tiles ----
    total = int(recon.size)
    recon_flat = recon.reshape(-1)          # row-major flatten == torch .view(B,-1)
    x_flat = x.reshape(-1)
    if total % 128:
        # Only the non-128-multiple case needs a pad, and only to 8x128 granularity.
        # Both operands get identical zeros -> diff 0 -> contributes 0 to the sum.
        padded_total = _round_up(total, 8 * 128)
        recon_flat = jnp.pad(recon_flat, (0, padded_total - total))
        x_flat = jnp.pad(x_flat, (0, padded_total - total))
    else:
        padded_total = total                # aligned: NO extra full-tensor copy
    n_rows = padded_total // 128
    recon_rows = recon_flat.reshape(n_rows, 128)
    x_rows = x_flat.reshape(n_rows, 128)

    tile_rows, chunk_rows = _choose_tiling(n_rows, tile_cap)
    num_blocks = pl.cdiv(n_rows, tile_rows)
    ragged = (n_rows % tile_rows) != 0      # last block partial -> mask in-kernel

    kernel = functools.partial(
        _mse_partial_kernel,
        tile_rows=tile_rows, chunk_rows=chunk_rows, n_rows=n_rows, ragged=ragged)

    cost = pl.CostEstimate(
        flops=3 * n_rows * 128,
        transcendentals=0,
        bytes_accessed=int(n_rows * 128 * (recon.dtype.itemsize + x.dtype.itemsize)
                           + num_blocks * 8 * 128 * 4))

    mse_partials = pl.pallas_call(
        kernel,
        out_shape=jax.ShapeDtypeStruct((num_blocks, 8, 128), jnp.float32),
        grid=(num_blocks,),
        in_specs=[pl.BlockSpec((tile_rows, 128), lambda i: (i, 0)),   # recon stream
                  pl.BlockSpec((tile_rows, 128), lambda i: (i, 0))],  # x stream
        out_specs=pl.BlockSpec((1, 8, 128), lambda i: (i, 0, 0)),
        compiler_params=pltpu.CompilerParams(
            # "parallel" lets v7x shard this mem-bound stream across both TCs
            # (verify 2-TC activity in a profile; no-op on single-TC v5e/v6e).
            dimension_semantics=("parallel",),
            # 2 inputs x 2 buffers x 4 MiB (f32 @ tile_rows=8192) = 16 MiB of stream
            # buffering; 48 MiB leaves headroom under v7x's 64 MiB physical VMEM and
            # overrides v5e's 16 MiB default scoped limit.
            vmem_limit_bytes=48 * 1024 * 1024,
        ),
        cost_estimate=cost,
    )(recon_rows, x_rows)

    # Final mix / normalization: a handful of scalar ops in the wrapper.
    lam = jnp.asarray(lambd, jnp.float32)
    bce_mean = jnp.sum(bce_fold) / float(B * n_classes)
    mse_mean = jnp.sum(mse_partials) / float(total)
    return lam * bce_mean + (1.0 - lam) * mse_mean


def _reference(pred, recon, x, target, lambd):
    B = pred.shape[0]
    bce = jnp.mean(-(target * jnp.maximum(jnp.log(pred), -100.0)
                     + (1.0 - target) * jnp.maximum(jnp.log(1.0 - pred), -100.0)))
    mse = jnp.mean((recon.reshape(B, -1) - x.reshape(B, -1)) ** 2)
    return lambd * bce + (1.0 - lambd) * mse


if __name__ == "__main__":
    key = jax.random.PRNGKey(0)
    k1, k2, k3, k4 = jax.random.split(key, 4)

    B, C, H, W = 2, 4, 16, 16
    n_classes = 4

    # Classification head output must be probabilities in (0, 1) for BCELoss.
    pred = jax.nn.sigmoid(jax.random.normal(k1, (B, n_classes), dtype=jnp.float32))
    target = jax.random.bernoulli(k2, 0.5, (B, n_classes)).astype(jnp.float32)

    # 1) Fully aligned path (total % 128 == 0, rows multiple of 8).
    recon = jax.random.normal(k3, (B, C, H, W), dtype=jnp.float32)
    x = jax.random.normal(k4, (B, C, H, W), dtype=jnp.float32)
    loss = double_loss(pred, recon, x, target, lambd=0.5)
    jax.block_until_ready(loss)
    ref = _reference(pred, recon, x, target, 0.5)
    assert jnp.allclose(loss, ref, rtol=1e-5, atol=1e-5), (loss, ref)

    # 2) total % 128 != 0 -> small 8x128-granularity zero-pad path.
    recon2 = jax.random.normal(k3, (B, C, 15, 15), dtype=jnp.float32)
    x2 = jax.random.normal(k4, (B, C, 15, 15), dtype=jnp.float32)
    loss2 = double_loss(pred, recon2, x2, target, lambd=0.3)
    ref2 = _reference(pred, recon2, x2, target, 0.3)
    assert jnp.allclose(loss2, ref2, rtol=1e-5, atol=1e-5), (loss2, ref2)

    # 3) 128-aligned but rows not a multiple of the tile -> in-kernel ragged mask.
    recon3 = jax.random.normal(k3, (B, C, 16, 12), dtype=jnp.float32)
    x3 = jax.random.normal(k4, (B, C, 16, 12), dtype=jnp.float32)
    loss3 = double_loss(pred, recon3, x3, target, lambd=0.7)
    ref3 = _reference(pred, recon3, x3, target, 0.7)
    assert jnp.allclose(loss3, ref3, rtol=1e-5, atol=1e-5), (loss3, ref3)

    # 4) Multi-block grid + ragged last block (small tile_cap override).
    recon4 = jax.random.normal(k3, (B, C, 40, 40), dtype=jnp.float32)
    x4 = jax.random.normal(k4, (B, C, 40, 40), dtype=jnp.float32)
    loss4 = double_loss(pred, recon4, x4, target, lambd=0.5, tile_cap=24)
    ref4 = _reference(pred, recon4, x4, target, 0.5)
    assert jnp.allclose(loss4, ref4, rtol=1e-5, atol=1e-5), (loss4, ref4)

    # 5) Multi-chunk fori_loop accumulation inside one tile (n_rows > 1024) + ragged.
    recon5 = jax.random.normal(k3, (B, C, 192, 128), dtype=jnp.float32)
    x5 = jax.random.normal(k4, (B, C, 192, 128), dtype=jnp.float32)
    loss5 = double_loss(pred, recon5, x5, target, lambd=0.4)
    ref5 = _reference(pred, recon5, x5, target, 0.4)
    assert jnp.allclose(loss5, ref5, rtol=1e-5, atol=1e-5), (loss5, ref5)

    jax.block_until_ready((loss, loss2, loss3, loss4, loss5))
    print("KERNEL_OK")
</pallas_src>

<mosaic_0001>
module attributes {stable_mosaic.version = 11 : i64} {
  func.func @_bce_fold_kernel(%arg0: i32, %arg1: memref<8x128xf32, #tpu.memory_space<vmem>>, %arg2: memref<8x128xf32, #tpu.memory_space<vmem>>, %arg3: memref<8x128xf32, #tpu.memory_space<vmem>>) attributes {dimension_semantics = [#tpu.dimension_semantics<arbitrary>], iteration_bounds = array<i64: 1>, scalar_prefetch = 0 : i64, scratch_operands = 0 : i64, tpu.core_type = #tpu.core_type<tc>, window_params = [{pipeline_mode = #tpu.pipeline_mode<synchronous>, transform_indices = @transform_0, window_bounds = array<i64: 8, 128>}, {pipeline_mode = #tpu.pipeline_mode<synchronous>, transform_indices = @transform_1, window_bounds = array<i64: 8, 128>}, {pipeline_mode = #tpu.pipeline_mode<synchronous>, transform_indices = @transform_2, window_bounds = array<i64: 8, 128>}]} {
    %c0 = arith.constant 0 : index
    %c0_0 = arith.constant 0 : index
    %0 = vector.load %arg1[%c0, %c0_0] : memref<8x128xf32, #tpu.memory_space<vmem>>, vector<8x128xf32>
    %c0_1 = arith.constant 0 : index
    %c0_2 = arith.constant 0 : index
    %1 = vector.load %arg2[%c0_1, %c0_2] : memref<8x128xf32, #tpu.memory_space<vmem>>, vector<8x128xf32>
    %2 = math.log %0 : vector<8x128xf32>
    %cst = arith.constant -1.000000e+02 : f32
    %3 = vector.broadcast %cst : f32 to vector<8x128xf32>
    %4 = arith.maximumf %2, %3 : vector<8x128xf32>
    %cst_3 = arith.constant 1.000000e+00 : f32
    %5 = vector.broadcast %cst_3 : f32 to vector<8x128xf32>
    %6 = arith.subf %5, %0 : vector<8x128xf32>
    %7 = math.log %6 : vector<8x128xf32>
    %cst_4 = arith.constant -1.000000e+02 : f32
    %8 = vector.broadcast %cst_4 : f32 to vector<8x128xf32>
    %9 = arith.maximumf %7, %8 : vector<8x128xf32>
    %10 = arith.mulf %1, %4 : vector<8x128xf32>
    %cst_5 = arith.constant 1.000000e+00 : f32
    %11 = vector.broadcast %cst_5 : f32 to vector<8x128xf32>
    %12 = arith.subf %11, %1 : vector<8x128xf32>
    %13 = arith.mulf %12, %9 : vector<8x128xf32>
    %14 = arith.addf %10, %13 : vector<8x128xf32>
    %cst_6 = arith.constant 0.000000e+00 : f32
    %15 = vector.broadcast %cst_6 : f32 to vector<8x128xf32>
    %16 = arith.subf %15, %14 : vector<8x128xf32>
    %17 = vector.shape_cast %16 : vector<8x128xf32> to vector<1x8x1x128xf32>
    %cst_7 = arith.constant dense<0.000000e+00> : vector<8x128xf32>
    %18 = vector.multi_reduction <add>, %17, %cst_7 [0, 2] : vector<1x8x1x128xf32> to vector<8x128xf32>
    %c0_8 = arith.constant 0 : index
    %c0_9 = arith.constant 0 : index
    %19 = vector.load %arg3[%c0_8, %c0_9] : memref<8x128xf32, #tpu.memory_space<vmem>>, vector<8x128xf32>
    tpu.vector_store %arg3[%c0_8, %c0_9], %18 {strides = array<i32>} : memref<8x128xf32, #tpu.memory_space<vmem>>, vector<8x128xf32>,
    return
  }
  func.func @transform_0(%arg0: i32) -> (i32, i32) {
    %c0_i32 = arith.constant 0 : i32
    %c0_i32_0 = arith.constant 0 : i32
    %c0_i32_1 = arith.constant 0 : i32
    return %c0_i32, %c0_i32_0 : i32, i32
  }
  func.func @transform_1(%arg0: i32) -> (i32, i32) {
    %c0_i32 = arith.constant 0 : i32
    %c0_i32_0 = arith.constant 0 : i32
    %c0_i32_1 = arith.constant 0 : i32
    return %c0_i32, %c0_i32_0 : i32, i32
  }
  func.func @transform_2(%arg0: i32) -> (i32, i32) {
    %c0_i32 = arith.constant 0 : i32
    %c0_i32_0 = arith.constant 0 : i32
    %c0_i32_1 = arith.constant 0 : i32
    return %c0_i32, %c0_i32_0 : i32, i32
  }
}

</mosaic_0001>

<bundles_post_ra>
// kernel: tpu_custom_call.1
= control target key start
LH: loop header
LB: loop body
LE: loop exit
PB: predicated region body
PF: predicated region fallthrough
CT: control target
= control target key end

     0   :  { %7 = vsyncpa [#allocation3], 0  ;;  %s186_s0 = inlined_call_operand.hbm [shape: f32[8,128], index: 0, kind: input, shape index: {}]   ;;  %s187_s1 = inlined_call_operand.hbm [shape: f32[8,128], index: 1, kind: input, shape index: {}]   ;;  %s188_s2 = inlined_call_operand.hbm [shape: f32[8,128], index: 2, kind: output, shape index: {}]  }
   0x1   :  { %8 = vsyncpa [#allocation6], 0 }
   0x2   :  { %9 = vsyncpa [#allocation4], 0  ;;  %s15_s11 = sshll.u32 %s186_s0, 4  ;;  %s159_s12 = smov [#allocation2]   ;;  %s16_s11 = int_to_ptr.hbm [resolvable:$true] %s15_s11 }
   0x3   :  { %s17_s13 = sshll.u32 %s159_s12, 4  ;;  %s26_s16 = sshll.u32 %s187_s1, 4  ;;  %s18_s13 = int_to_ptr.vmem [resolvable:$true] %s17_s13  ;;  %s27_s16 = int_to_ptr.hbm [resolvable:$true] %s26_s16 }
   0x4   :  { %20 = dma.hbm_to_vmem [thread:$0]  %s16_s11, 128, %s18_s13, [#allocation3]  }
   0x5   :  { %s160_s17 = smov [#allocation5]  }
   0x6   :  { %s28_s18 = sshll.u32 %s160_s17, 4  ;;  %s29_s18 = int_to_ptr.vmem [resolvable:$true] %s28_s18 }
   0x7   :  { %31 = dma.hbm_to_vmem [thread:$0]  %s27_s16, 128, %s29_s18, [#allocation6]  }
   0x8   :  { %153 = dma.done.wait [#allocation3], 128  }
   0x9   :  { %154 = vsyncadd [#allocation3], 4294967168 }
   0xa   :  { %155 = dma.done.wait [#allocation6], 128  }
   0xb   :  { %156 = vsyncadd [#allocation6], 4294967168  ;;  %v40_v0 = vld [vmem:[#allocation2] sm:$0xff]  ;;  %v41_v3 = vld [vmem:[#allocation5] sm:$0xff]  ;;  %s161_s0 = smov [#allocation7]   ;;  %s63_s21 = sshll.u32 %s188_s2, 4  ;;  %s64_s21 = int_to_ptr.hbm [resolvable:$true] %s63_s21 }
   0xc   :  { %77 = vlog2.f32 %v40_v0  ;;  %v45_v1 = vsub.f32 1.0, %v40_v0  ;;  %v50_v8 = vsub.f32 1.0, %v41_v3  ;;  %s61_s1 = sshll.u32 %s161_s0, 4  ;;  %s62_s1 = int_to_ptr.vmem [resolvable:$true] %s61_s1 }
   0xe   :  { %79 = vlog2.f32 %v45_v1 }
  0x12   :  { %v78_v2 = vpop.eup %77 }
  0x13   :  { %v43_v4 = vmul.f32 0.6931472, %v78_v2 }
  0x14   :  { %v80_v5 = vpop.eup %79 }
  0x15   :  { %v44_v6 = vmax.f32 %v43_v4, -100.0  ;;  %v47_v7 = vmul.f32 0.6931472, %v80_v5 }
  0x17   :  { %v48_v9 = vmax.f32 %v47_v7, -100.0  ;;  %v49_v10 = vmul.f32 %v44_v6, %v41_v3 }
  0x19   :  { %v51_v11 = vmul.f32 %v50_v8, %v48_v9 }
  0x1b   :  { %v52_v12 = vadd.f32 %v51_v11, %v49_v10 }
  0x1d   :  { %v53_v13 = vsub.f32 0.0, %v52_v12 }
  0x1f   :  { %55 = vst [vmem:[#allocation7] sm:$0xff] %v53_v13 }
  0x20   :  { %66 = dma.vmem_to_hbm [thread:$0]  %s62_s1, 128, %s64_s21, [#allocation4]  }
  0x21   :  { %157 = dma.done.wait [#allocation4], 128  }
  0x22   :  { %158 = vsyncadd [#allocation4], 4294967168 }
  0x23   :  { %71 = vsyncpa [#allocation3], 1 }
  0x24   :  { %72 = vsyncpa [#allocation6], 1 }
  0x25   :  { %73 = vsyncpa [#allocation4], 1 }

</bundles_post_ra>
